<compile_context>
chip_gen: v5e
topology: v5e:2x2
jax: 0.10.0
libtpu: 0.0.40
codegen_flags: <defaults>
</compile_context>

<pallas_src>
import functools

import jax
import jax.numpy as jnp
from jax.experimental import pallas as pl
from jax.experimental.pallas import tpu as pltpu


def _round_up(x, m):
    return (x + m - 1) // m * m


# --------------------------------------------------------------------------- #
# Kernel: one grid step = one batch group x one chunk of timesteps.
# --------------------------------------------------------------------------- #
def _rollout_kernel(xs_ref, h0_ref, w0_ref, b0_ref, wg_ref, bg_ref,
                    w1_ref, b1_ref, w2_ref, b2_ref,
                    o_ref, hout_ref, h_carry_ref,
                    *, chunk, bsz, hp, t_total):
    """Refs (padded shapes; G = batch groups, HP = padded hidden, OP = padded out):
      xs_ref   (1, chunk*bsz, IP)   chunk of inputs for this batch group
      h0_ref   (1, bsz, HP)         initial hidden for this batch group
      w0/b0    (IP, HP) / (1, HP)   Dense_0
      wg/bg    (2HP, 4HP) / (1,4HP) fused GRU gates [r | z | Wh.x+b_ih | Uh.h+b_hh]
      w1/b1    (HP, HP) / (1, HP)   Dense_1
      w2/b2    (HP, OP) / (1, OP)   Dense_2
      o_ref    (1, chunk*bsz, OP)   per-step logits (lane-dense, padded)
      hout_ref (1, bsz, HP)         final hidden
      h_carry_ref (bsz, HP) f32     VMEM scratch: hidden carried across chunks
    """
    c = pl.program_id(1)                     # time-chunk index ("arbitrary" axis)

    @pl.when(c == 0)
    def _():
        h_carry_ref[...] = h0_ref[0]

    wdt = w0_ref.dtype
    f32 = jnp.float32

    # ---- Dense_0 + ReLU for the whole chunk in one lane-dense matmul --------
    emb = jnp.dot(xs_ref[0].astype(wdt), w0_ref[...], preferred_element_type=f32)
    emb = jnp.maximum(emb + b0_ref[...], 0.0).astype(wdt)          # (chunk*bsz, HP)

    # ---- GRU recurrence: one fused gate matmul per step ---------------------
    w_gates = wg_ref[...]
    b_gates = bg_ref[...]
    mask_time = (t_total % chunk) != 0       # only needed when T % chunk != 0

    h = h_carry_ref[...]                     # f32 hidden carry
    hs = []
    for i in range(chunk):                   # small static unroll (chunk <= 8)
        e_i = emb[i * bsz:(i + 1) * bsz, :]                        # tile-aligned rows
        lhs = jnp.concatenate([e_i, h.astype(wdt)], axis=1)        # (bsz, 2HP), 128-aligned
        gates = jnp.dot(lhs, w_gates, preferred_element_type=f32) + b_gates
        r = jax.nn.sigmoid(gates[:, 0:hp])                         # Wr.x + Ur.h + b_r
        z = jax.nn.sigmoid(gates[:, hp:2 * hp])                    # Wz.x + Uz.h + b_z
        h_tilde = jnp.tanh(gates[:, 2 * hp:3 * hp]                 # Wh.x + b_ih
                           + r * gates[:, 3 * hp:4 * hp])          # + r*(Uh.h + b_hh)
        h_new = (1.0 - z) * h_tilde + z * h
        if mask_time:                        # hold h past the true sequence end
            h_new = jnp.where(c * chunk + i < t_total, h_new, h)
        hs.append(h_new)
        h = h_new

    h_carry_ref[...] = h
    hout_ref[0] = h

    # ---- Actor head (Dense_1 + ReLU, Dense_2) batched over the chunk --------
    h_all = jnp.concatenate(hs, axis=0).astype(wdt)                # (chunk*bsz, HP)
    e1 = jnp.dot(h_all, w1_ref[...], preferred_element_type=f32)
    e1 = jnp.maximum(e1 + b1_ref[...], 0.0).astype(wdt)
    logits = jnp.dot(e1, w2_ref[...], preferred_element_type=f32) + b2_ref[...]
    o_ref[0] = logits.astype(o_ref.dtype)                          # lane-dense store


# --------------------------------------------------------------------------- #
# Wrappers.
# --------------------------------------------------------------------------- #
def rnn_actor_ippo_rollout(xs, h0, pp, *, output_dim, chunk=8, batch_groups=1):
    """xs: [T, B, input_dim], h0: [B, H] -> (logits [T, B, output_dim], h_final [B, H]).

    `pp` is the padded parameter dict from `pack_params`.  `batch_groups > 1`
    adds a leading "parallel" grid axis over independent batch groups (feeds
    both v7x TensorCores); `chunk` timesteps are processed per grid step.
    """
    T, B, input_dim = xs.shape
    H = h0.shape[1]
    IP, HP = pp["w0"].shape
    OP = pp["w2"].shape[1]
    G = batch_groups
    Bg = _round_up(-(-B // G), 8)            # per-group batch, sublane-aligned
    B_pad = G * Bg
    T_pad = _round_up(T, chunk)
    num_chunks = T_pad // chunk

    # Pad + regroup inputs (wrapper-side layout plumbing, outside the kernel).
    xs_p = jnp.zeros((T_pad, B_pad, IP), jnp.float32).at[:T, :B, :input_dim].set(xs)
    xs_p = xs_p.reshape(T_pad, G, Bg, IP).transpose(1, 0, 2, 3).reshape(G, T_pad * Bg, IP)
    h0_p = jnp.zeros((B_pad, HP), jnp.float32).at[:B, :H].set(h0).reshape(G, Bg, HP)

    kernel = functools.partial(_rollout_kernel, chunk=chunk, bsz=Bg, hp=HP, t_total=T)

    grid_spec = pltpu.PrefetchScalarGridSpec(
        num_scalar_prefetch=0,
        grid=(G, num_chunks),
        in_specs=[
            pl.BlockSpec((1, chunk * Bg, IP), lambda g, c: (g, c, 0)),   # xs chunk
            pl.BlockSpec((1, Bg, HP), lambda g, c: (g, 0, 0)),           # h0
            pl.BlockSpec(pp["w0"].shape, lambda g, c: (0, 0)),           # resident params
            pl.BlockSpec(pp["b0"].shape, lambda g, c: (0, 0)),
            pl.BlockSpec(pp["wg"].shape, lambda g, c: (0, 0)),
            pl.BlockSpec(pp["bg"].shape, lambda g, c: (0, 0)),
            pl.BlockSpec(pp["w1"].shape, lambda g, c: (0, 0)),
            pl.BlockSpec(pp["b1"].shape, lambda g, c: (0, 0)),
            pl.BlockSpec(pp["w2"].shape, lambda g, c: (0, 0)),
            pl.BlockSpec(pp["b2"].shape, lambda g, c: (0, 0)),
        ],
        out_specs=(
            pl.BlockSpec((1, chunk * Bg, OP), lambda g, c: (g, c, 0)),   # logits
            pl.BlockSpec((1, Bg, HP), lambda g, c: (g, 0, 0)),           # final hidden
        ),
        scratch_shapes=[
            pltpu.VMEM((Bg, HP), jnp.float32),                           # hidden carry
        ],
    )

    logits_p, h_final_p = pl.pallas_call(
        kernel,
        out_shape=(jax.ShapeDtypeStruct((G, T_pad * Bg, OP), jnp.float32),
                   jax.ShapeDtypeStruct((G, Bg, HP), jnp.float32)),
        grid_spec=grid_spec,
        compiler_params=pltpu.CompilerParams(
            dimension_semantics=("parallel", "arbitrary")),
    )(xs_p, h0_p, pp["w0"], pp["b0"], pp["wg"], pp["bg"],
      pp["w1"], pp["b1"], pp["w2"], pp["b2"])

    logits = (logits_p.reshape(G, T_pad, Bg, OP).transpose(1, 0, 2, 3)
              .reshape(T_pad, B_pad, OP)[:T, :B, :output_dim])
    h_final = h_final_p.reshape(B_pad, HP)[:B, :H]
    return logits, h_final


def rnn_actor_ippo_forward(x, h, pp, *, output_dim):
    """Single step.  x: [B, input_dim], h: [B, H] -> (logits [B, out], hidden [B, H])."""
    logits, h_new = rnn_actor_ippo_rollout(x[None], h, pp, output_dim=output_dim, chunk=1)
    return logits[0], h_new


# --------------------------------------------------------------------------- #
# Parameter construction / 128-lane-padded packing.
# --------------------------------------------------------------------------- #
def init_params(key, input_dim, output_dim, hidden_dim):
    """Synthetic parameters matching the module's shapes (nn.Linear weights are
    stored pre-transposed to (in, out)).  Biases are nonzero so the correctness
    check exercises every bias slot."""
    ks = jax.random.split(key, 16)
    u = lambda k, shape, s: jax.random.uniform(k, shape, jnp.float32, -s, s)
    n = lambda k, shape: 0.01 * jax.random.normal(k, shape, jnp.float32)
    H = hidden_dim
    return {
        "w0": u(ks[0], (input_dim, H), 1.0 / jnp.sqrt(input_dim)),
        "b0": u(ks[1], (H,), 1.0 / jnp.sqrt(input_dim)),
        "wz": n(ks[2], (H, H)), "uz": n(ks[3], (H, H)), "bz": n(ks[4], (H,)),
        "wr": n(ks[5], (H, H)), "ur": n(ks[6], (H, H)), "br": n(ks[7], (H,)),
        "wh": n(ks[8], (H, H)), "uh": n(ks[9], (H, H)),
        "bih": n(ks[10], (H,)), "bhh": n(ks[11], (H,)),
        "w1": u(ks[12], (H, H), 1.0 / jnp.sqrt(H)),
        "b1": u(ks[13], (H,), 1.0 / jnp.sqrt(H)),
        "w2": u(ks[14], (H, output_dim), 1.0 / jnp.sqrt(H)),
        "b2": u(ks[15], (output_dim,), 1.0 / jnp.sqrt(H)),
        # TODO(synk): Dense_3 / Dense_4 exist in __init__ but are unused by
        # forward(); they are intentionally omitted.
    }


def pack_params(p, input_dim, hidden_dim, output_dim, dtype=jnp.float32):
    """Pad every weight block so each logical output group occupies a full
    128-lane column group; the GRU gate weights are fused into one (2HP, 4HP)
    matrix for [emb | h] @ [[Wr Wz Wh 0],[Ur Uz 0 Uh]].  Weights may be cast to
    bf16; biases stay f32 (element-wise math is f32 on all generations)."""
    H = hidden_dim
    IP = _round_up(input_dim, 128)
    HP = _round_up(H, 128)
    OP = _round_up(output_dim, 128)
    f32 = jnp.float32

    w0 = jnp.zeros((IP, HP), f32).at[:input_dim, :H].set(p["w0"])
    b0 = jnp.zeros((1, HP), f32).at[0, :H].set(p["b0"])

    wg = jnp.zeros((2 * HP, 4 * HP), f32)
    wg = wg.at[0:H, 0:H].set(p["wr"]).at[HP:HP + H, 0:H].set(p["ur"])
    wg = wg.at[0:H, HP:HP + H].set(p["wz"]).at[HP:HP + H, HP:HP + H].set(p["uz"])
    wg = wg.at[0:H, 2 * HP:2 * HP + H].set(p["wh"])
    wg = wg.at[HP:HP + H, 3 * HP:3 * HP + H].set(p["uh"])
    bg = jnp.zeros((1, 4 * HP), f32)
    bg = bg.at[0, 0:H].set(p["br"]).at[0, HP:HP + H].set(p["bz"])
    bg = bg.at[0, 2 * HP:2 * HP + H].set(p["bih"]).at[0, 3 * HP:3 * HP + H].set(p["bhh"])

    w1 = jnp.zeros((HP, HP), f32).at[:H, :H].set(p["w1"])
    b1 = jnp.zeros((1, HP), f32).at[0, :H].set(p["b1"])
    w2 = jnp.zeros((HP, OP), f32).at[:H, :output_dim].set(p["w2"])
    b2 = jnp.zeros((1, OP), f32).at[0, :output_dim].set(p["b2"])

    return {"w0": w0.astype(dtype), "b0": b0,
            "wg": wg.astype(dtype), "bg": bg,
            "w1": w1.astype(dtype), "b1": b1,
            "w2": w2.astype(dtype), "b2": b2}


# --------------------------------------------------------------------------- #
# Pure-JAX references for correctness checking.
# --------------------------------------------------------------------------- #
def _reference_forward(x, h, p):
    emb = jnp.maximum(x @ p["w0"] + p["b0"], 0.0)
    r = jax.nn.sigmoid(emb @ p["wr"] + h @ p["ur"] + p["br"])
    z = jax.nn.sigmoid(emb @ p["wz"] + h @ p["uz"] + p["bz"])
    h_tilde = jnp.tanh(emb @ p["wh"] + p["bih"] + r * (h @ p["uh"] + p["bhh"]))
    h_t = (1.0 - z) * h_tilde + z * h
    e1 = jnp.maximum(h_t @ p["w1"] + p["b1"], 0.0)
    out = e1 @ p["w2"] + p["b2"]
    return out, h_t


def _reference_rollout(xs, h0, p):
    def step(h, x):
        out, h_t = _reference_forward(x, h, p)
        return h_t, out
    h_final, outs = jax.lax.scan(step, h0, xs)
    return outs, h_final


# --------------------------------------------------------------------------- #
if __name__ == "__main__":
    key = jax.random.PRNGKey(0)
    k_param, k_x, k_h, k_xs, k_x2, k_h2 = jax.random.split(key, 6)

    batch, input_dim, hidden_dim, output_dim, seq = 8, 16, 32, 8, 12

    params = init_params(k_param, input_dim, output_dim, hidden_dim)
    pp = pack_params(params, input_dim, hidden_dim, output_dim)

    x = jax.random.normal(k_x, (batch, input_dim), jnp.float32)
    h = jax.random.normal(k_h, (batch, hidden_dim), jnp.float32)

    # --- single step (f32 weights) ---
    out, h_new = rnn_actor_ippo_forward(x, h, pp, output_dim=output_dim)
    jax.block_until_ready((out, h_new))
    ref_out, ref_h = _reference_forward(x, h, params)
    assert out.shape == (batch, output_dim) and h_new.shape == (batch, hidden_dim)
    assert jnp.allclose(out, ref_out, atol=2e-3, rtol=2e-3)
    assert jnp.allclose(h_new, ref_h, atol=2e-3, rtol=2e-3)

    # --- rollout, T=12 with chunk=8 (exercises the partial-chunk time mask) ---
    xs = jax.random.normal(k_xs, (seq, batch, input_dim), jnp.float32)
    outs, h_final = rnn_actor_ippo_rollout(xs, h, pp, output_dim=output_dim, chunk=8)
    jax.block_until_ready((outs, h_final))
    ref_outs, ref_hf = _reference_rollout(xs, h, params)
    assert outs.shape == (seq, batch, output_dim)
    assert jnp.allclose(outs, ref_outs, atol=2e-3, rtol=2e-3)
    assert jnp.allclose(h_final, ref_hf, atol=2e-3, rtol=2e-3)

    # --- bf16 weight pack: native bf16 MXU path; element-wise math stays f32 ---
    pp16 = pack_params(params, input_dim, hidden_dim, output_dim, dtype=jnp.bfloat16)
    outs16, hf16 = rnn_actor_ippo_rollout(xs, h, pp16, output_dim=output_dim, chunk=8)
    jax.block_until_ready((outs16, hf16))
    assert jnp.allclose(outs16, ref_outs, atol=1e-1, rtol=1e-1)
    assert jnp.allclose(hf16, ref_hf, atol=1e-1, rtol=1e-1)

    # --- two batch groups: leading "parallel" grid axis (v7x dual TensorCore) ---
    batch2 = 16
    xs2 = jax.random.normal(k_x2, (seq, batch2, input_dim), jnp.float32)
    h2 = jax.random.normal(k_h2, (batch2, hidden_dim), jnp.float32)
    outs2, hf2 = rnn_actor_ippo_rollout(xs2, h2, pp, output_dim=output_dim,
                                        chunk=4, batch_groups=2)
    jax.block_until_ready((outs2, hf2))
    ref_outs2, ref_hf2 = _reference_rollout(xs2, h2, params)
    assert jnp.allclose(outs2, ref_outs2, atol=2e-3, rtol=2e-3)
    assert jnp.allclose(hf2, ref_hf2, atol=2e-3, rtol=2e-3)

    print("KERNEL_OK")
</pallas_src>

<mosaic_0001>
module attributes {stable_mosaic.version = 11 : i64} {
  func.func @_rollout_kernel(%arg0: i32, %arg1: i32, %arg2: memref<1x8x128xf32, #tpu.memory_space<vmem>>, %arg3: memref<1x8x128xf32, #tpu.memory_space<vmem>>, %arg4: memref<128x128xf32, #tpu.memory_space<vmem>>, %arg5: memref<1x128xf32, #tpu.memory_space<vmem>>, %arg6: memref<256x512xf32, #tpu.memory_space<vmem>>, %arg7: memref<1x512xf32, #tpu.memory_space<vmem>>, %arg8: memref<128x128xf32, #tpu.memory_space<vmem>>, %arg9: memref<1x128xf32, #tpu.memory_space<vmem>>, %arg10: memref<128x128xf32, #tpu.memory_space<vmem>>, %arg11: memref<1x128xf32, #tpu.memory_space<vmem>>, %arg12: memref<1x8x128xf32, #tpu.memory_space<vmem>>, %arg13: memref<1x8x128xf32, #tpu.memory_space<vmem>>, %arg14: memref<8x128xf32, #tpu.memory_space<vmem>>) attributes {dimension_semantics = [#tpu.dimension_semantics<parallel>, #tpu.dimension_semantics<arbitrary>], iteration_bounds = array<i64: 1, 1>, scalar_prefetch = 0 : i64, scratch_operands = 1 : i64, tpu.core_type = #tpu.core_type<tc>, window_params = [{transform_indices = @transform_0, window_bounds = array<i64: 1, 8, 128>}, {transform_indices = @transform_1, window_bounds = array<i64: 1, 8, 128>}, {pipeline_mode = #tpu.pipeline_mode<synchronous>, transform_indices = @transform_2, window_bounds = array<i64: 128, 128>}, {pipeline_mode = #tpu.pipeline_mode<synchronous>, transform_indices = @transform_3, window_bounds = array<i64: 1, 128>}, {pipeline_mode = #tpu.pipeline_mode<synchronous>, transform_indices = @transform_4, window_bounds = array<i64: 256, 512>}, {pipeline_mode = #tpu.pipeline_mode<synchronous>, transform_indices = @transform_5, window_bounds = array<i64: 1, 512>}, {pipeline_mode = #tpu.pipeline_mode<synchronous>, transform_indices = @transform_6, window_bounds = array<i64: 128, 128>}, {pipeline_mode = #tpu.pipeline_mode<synchronous>, transform_indices = @transform_7, window_bounds = array<i64: 1, 128>}, {pipeline_mode = #tpu.pipeline_mode<synchronous>, transform_indices = @transform_8, window_bounds = array<i64: 128, 128>}, {pipeline_mode = #tpu.pipeline_mode<synchronous>, transform_indices = @transform_9, window_bounds = array<i64: 1, 128>}, {transform_indices = @transform_10, window_bounds = array<i64: 1, 8, 128>}, {transform_indices = @transform_11, window_bounds = array<i64: 1, 8, 128>}]} {
    %c0_i32 = arith.constant 0 : i32
    %0 = arith.cmpi eq, %arg1, %c0_i32 : i32
    %1 = arith.extui %0 : i1 to i32
    %c0_i32_0 = arith.constant 0 : i32
    %2 = arith.cmpi ne, %1, %c0_i32_0 : i32
    scf.if %2 {
      %c0_37 = arith.constant 0 : index
      %c0_38 = arith.constant 0 : index
      %c0_39 = arith.constant 0 : index
      %60 = vector.load %arg3[%c0_37, %c0_38, %c0_39] : memref<1x8x128xf32, #tpu.memory_space<vmem>>, vector<1x8x128xf32>
      %61 = vector.shape_cast %60 : vector<1x8x128xf32> to vector<8x128xf32>
      %c0_40 = arith.constant 0 : index
      %c0_41 = arith.constant 0 : index
      %62 = vector.load %arg14[%c0_40, %c0_41] : memref<8x128xf32, #tpu.memory_space<vmem>>, vector<8x128xf32>
      tpu.vector_store %arg14[%c0_40, %c0_41], %61 {strides = array<i32>} : memref<8x128xf32, #tpu.memory_space<vmem>>, vector<8x128xf32>,
    } else {
    }
    %c0 = arith.constant 0 : index
    %c0_1 = arith.constant 0 : index
    %c0_2 = arith.constant 0 : index
    %3 = vector.load %arg2[%c0, %c0_1, %c0_2] : memref<1x8x128xf32, #tpu.memory_space<vmem>>, vector<1x8x128xf32>
    %4 = vector.shape_cast %3 : vector<1x8x128xf32> to vector<8x128xf32>
    %c0_3 = arith.constant 0 : index
    %c0_4 = arith.constant 0 : index
    %5 = vector.load %arg4[%c0_3, %c0_4] : memref<128x128xf32, #tpu.memory_space<vmem>>, vector<128x128xf32>
    %cst = arith.constant dense<0.000000e+00> : vector<8x128xf32>
    %6 = tpu.matmul %4, %5, %cst {dimension_numbers = #tpu.dot_dimension_numbers<[1], [0], [0], [1], [0, 0, 1, 1], [], []>} : vector<8x128xf32>, vector<128x128xf32>, vector<8x128xf32> -> vector<8x128xf32>
    %c0_5 = arith.constant 0 : index
    %c0_6 = arith.constant 0 : index
    %7 = vector.load %arg5[%c0_5, %c0_6] : memref<1x128xf32, #tpu.memory_space<vmem>>, vector<1x128xf32>
    %8 = vector.broadcast %7 : vector<1x128xf32> to vector<8x128xf32>
    %9 = arith.addf %6, %8 : vector<8x128xf32>
    %cst_7 = arith.constant 0.000000e+00 : f32
    %10 = vector.broadcast %cst_7 : f32 to vector<8x128xf32>
    %11 = arith.maximumf %9, %10 : vector<8x128xf32>
    %c0_8 = arith.constant 0 : index
    %c0_9 = arith.constant 0 : index
    %12 = vector.load %arg6[%c0_8, %c0_9] : memref<256x512xf32, #tpu.memory_space<vmem>>, vector<256x512xf32>
    %c0_10 = arith.constant 0 : index
    %c0_11 = arith.constant 0 : index
    %13 = vector.load %arg7[%c0_10, %c0_11] : memref<1x512xf32, #tpu.memory_space<vmem>>, vector<1x512xf32>
    %c0_12 = arith.constant 0 : index
    %c0_13 = arith.constant 0 : index
    %14 = vector.load %arg14[%c0_12, %c0_13] : memref<8x128xf32, #tpu.memory_space<vmem>>, vector<8x128xf32>
    %15 = tpu.concatenate %11, %14 in 1 : vector<8x128xf32>, vector<8x128xf32> -> vector<8x256xf32>
    %cst_14 = arith.constant dense<0.000000e+00> : vector<8x512xf32>
    %16 = tpu.matmul %15, %12, %cst_14 {dimension_numbers = #tpu.dot_dimension_numbers<[1], [0], [0], [1], [0, 0, 1, 1], [], []>} : vector<8x256xf32>, vector<256x512xf32>, vector<8x512xf32> -> vector<8x512xf32>
    %17 = vector.broadcast %13 : vector<1x512xf32> to vector<8x512xf32>
    %18 = arith.addf %16, %17 : vector<8x512xf32>
    %19 = vector.extract_strided_slice %18 {offsets = [0, 0], sizes = [8, 128], strides = [1, 1]} : vector<8x512xf32> to vector<8x128xf32>
    %20 = arith.negf %19 : vector<8x128xf32>
    %21 = math.exp %20 : vector<8x128xf32>
    %cst_15 = arith.constant 1.000000e+00 : f32
    %22 = vector.broadcast %cst_15 : f32 to vector<8x128xf32>
    %23 = arith.addf %22, %21 : vector<8x128xf32>
    %24 = arith.divf %22, %23 : vector<8x128xf32>
    %25 = vector.extract_strided_slice %18 {offsets = [0, 128], sizes = [8, 128], strides = [1, 1]} : vector<8x512xf32> to vector<8x128xf32>
    %26 = arith.negf %25 : vector<8x128xf32>
    %27 = math.exp %26 : vector<8x128xf32>
    %cst_16 = arith.constant 1.000000e+00 : f32
    %28 = vector.broadcast %cst_16 : f32 to vector<8x128xf32>
    %29 = arith.addf %28, %27 : vector<8x128xf32>
    %30 = arith.divf %28, %29 : vector<8x128xf32>
    %31 = vector.extract_strided_slice %18 {offsets = [0, 256], sizes = [8, 128], strides = [1, 1]} : vector<8x512xf32> to vector<8x128xf32>
    %32 = vector.extract_strided_slice %18 {offsets = [0, 384], sizes = [8, 128], strides = [1, 1]} : vector<8x512xf32> to vector<8x128xf32>
    %33 = arith.mulf %24, %32 : vector<8x128xf32>
    %34 = arith.addf %31, %33 : vector<8x128xf32>
    %35 = math.tanh %34 : vector<8x128xf32>
    %cst_17 = arith.constant 1.000000e+00 : f32
    %36 = vector.broadcast %cst_17 : f32 to vector<8x128xf32>
    %37 = arith.subf %36, %30 : vector<8x128xf32>
    %38 = arith.mulf %37, %35 : vector<8x128xf32>
    %39 = arith.mulf %30, %14 : vector<8x128xf32>
    %40 = arith.addf %38, %39 : vector<8x128xf32>
    %c0_18 = arith.constant 0 : index
    %c0_19 = arith.constant 0 : index
    %41 = vector.load %arg14[%c0_18, %c0_19] : memref<8x128xf32, #tpu.memory_space<vmem>>, vector<8x128xf32>
    tpu.vector_store %arg14[%c0_18, %c0_19], %40 {strides = array<i32>} : memref<8x128xf32, #tpu.memory_space<vmem>>, vector<8x128xf32>,
    %c0_20 = arith.constant 0 : index
    %c0_21 = arith.constant 0 : index
    %c0_22 = arith.constant 0 : index
    %42 = vector.load %arg13[%c0_20, %c0_21, %c0_22] : memref<1x8x128xf32, #tpu.memory_space<vmem>>, vector<1x8x128xf32>
    %43 = vector.shape_cast %42 : vector<1x8x128xf32> to vector<8x128xf32>
    %44 = vector.shape_cast %40 : vector<8x128xf32> to vector<1x8x128xf32>
    tpu.vector_store %arg13[%c0_20, %c0_21, %c0_22], %44 {strides = array<i32>} : memref<1x8x128xf32, #tpu.memory_space<vmem>>, vector<1x8x128xf32>,
    %c0_23 = arith.constant 0 : index
    %c0_24 = arith.constant 0 : index
    %45 = vector.load %arg8[%c0_23, %c0_24] : memref<128x128xf32, #tpu.memory_space<vmem>>, vector<128x128xf32>
    %cst_25 = arith.constant dense<0.000000e+00> : vector<8x128xf32>
    %46 = tpu.matmul %40, %45, %cst_25 {dimension_numbers = #tpu.dot_dimension_numbers<[1], [0], [0], [1], [0, 0, 1, 1], [], []>} : vector<8x128xf32>, vector<128x128xf32>, vector<8x128xf32> -> vector<8x128xf32>
    %c0_26 = arith.constant 0 : index
    %c0_27 = arith.constant 0 : index
    %47 = vector.load %arg9[%c0_26, %c0_27] : memref<1x128xf32, #tpu.memory_space<vmem>>, vector<1x128xf32>
    %48 = vector.broadcast %47 : vector<1x128xf32> to vector<8x128xf32>
    %49 = arith.addf %46, %48 : vector<8x128xf32>
    %cst_28 = arith.constant 0.000000e+00 : f32
    %50 = vector.broadcast %cst_28 : f32 to vector<8x128xf32>
    %51 = arith.maximumf %49, %50 : vector<8x128xf32>
    %c0_29 = arith.constant 0 : index
    %c0_30 = arith.constant 0 : index
    %52 = vector.load %arg10[%c0_29, %c0_30] : memref<128x128xf32, #tpu.memory_space<vmem>>, vector<128x128xf32>
    %cst_31 = arith.constant dense<0.000000e+00> : vector<8x128xf32>
    %53 = tpu.matmul %51, %52, %cst_31 {dimension_numbers = #tpu.dot_dimension_numbers<[1], [0], [0], [1], [0, 0, 1, 1], [], []>} : vector<8x128xf32>, vector<128x128xf32>, vector<8x128xf32> -> vector<8x128xf32>
    %c0_32 = arith.constant 0 : index
    %c0_33 = arith.constant 0 : index
    %54 = vector.load %arg11[%c0_32, %c0_33] : memref<1x128xf32, #tpu.memory_space<vmem>>, vector<1x128xf32>
    %55 = vector.broadcast %54 : vector<1x128xf32> to vector<8x128xf32>
    %56 = arith.addf %53, %55 : vector<8x128xf32>
    %c0_34 = arith.constant 0 : index
    %c0_35 = arith.constant 0 : index
    %c0_36 = arith.constant 0 : index
    %57 = vector.load %arg12[%c0_34, %c0_35, %c0_36] : memref<1x8x128xf32, #tpu.memory_space<vmem>>, vector<1x8x128xf32>
    %58 = vector.shape_cast %57 : vector<1x8x128xf32> to vector<8x128xf32>
    %59 = vector.shape_cast %56 : vector<8x128xf32> to vector<1x8x128xf32>
    tpu.vector_store %arg12[%c0_34, %c0_35, %c0_36], %59 {strides = array<i32>} : memref<1x8x128xf32, #tpu.memory_space<vmem>>, vector<1x8x128xf32>,
    return
  }
  func.func @transform_0(%arg0: i32, %arg1: i32) -> (i32, i32, i32) {
    %c0_i32 = arith.constant 0 : i32
    %c0_i32_0 = arith.constant 0 : i32
    return %arg0, %arg1, %c0_i32 : i32, i32, i32
  }
  func.func @transform_1(%arg0: i32, %arg1: i32) -> (i32, i32, i32) {
    %c0_i32 = arith.constant 0 : i32
    %c0_i32_0 = arith.constant 0 : i32
    %c0_i32_1 = arith.constant 0 : i32
    return %arg0, %c0_i32, %c0_i32_0 : i32, i32, i32
  }
  func.func @transform_2(%arg0: i32, %arg1: i32) -> (i32, i32) {
    %c0_i32 = arith.constant 0 : i32
    %c0_i32_0 = arith.constant 0 : i32
    %c0_i32_1 = arith.constant 0 : i32
    return %c0_i32, %c0_i32_0 : i32, i32
  }
  func.func @transform_3(%arg0: i32, %arg1: i32) -> (i32, i32) {
    %c0_i32 = arith.constant 0 : i32
    %c0_i32_0 = arith.constant 0 : i32
    %c0_i32_1 = arith.constant 0 : i32
    return %c0_i32, %c0_i32_0 : i32, i32
  }
  func.func @transform_4(%arg0: i32, %arg1: i32) -> (i32, i32) {
    %c0_i32 = arith.constant 0 : i32
    %c0_i32_0 = arith.constant 0 : i32
    %c0_i32_1 = arith.constant 0 : i32
    return %c0_i32, %c0_i32_0 : i32, i32
  }
  func.func @transform_5(%arg0: i32, %arg1: i32) -> (i32, i32) {
    %c0_i32 = arith.constant 0 : i32
    %c0_i32_0 = arith.constant 0 : i32
    %c0_i32_1 = arith.constant 0 : i32
    return %c0_i32, %c0_i32_0 : i32, i32
  }
  func.func @transform_6(%arg0: i32, %arg1: i32) -> (i32, i32) {
    %c0_i32 = arith.constant 0 : i32
    %c0_i32_0 = arith.constant 0 : i32
    %c0_i32_1 = arith.constant 0 : i32
    return %c0_i32, %c0_i32_0 : i32, i32
  }
  func.func @transform_7(%arg0: i32, %arg1: i32) -> (i32, i32) {
    %c0_i32 = arith.constant 0 : i32
    %c0_i32_0 = arith.constant 0 : i32
    %c0_i32_1 = arith.constant 0 : i32
    return %c0_i32, %c0_i32_0 : i32, i32
  }
  func.func @transform_8(%arg0: i32, %arg1: i32) -> (i32, i32) {
    %c0_i32 = arith.constant 0 : i32
    %c0_i32_0 = arith.constant 0 : i32
    %c0_i32_1 = arith.constant 0 : i32
    return %c0_i32, %c0_i32_0 : i32, i32
  }
  func.func @transform_9(%arg0: i32, %arg1: i32) -> (i32, i32) {
    %c0_i32 = arith.constant 0 : i32
    %c0_i32_0 = arith.constant 0 : i32
    %c0_i32_1 = arith.constant 0 : i32
    return %c0_i32, %c0_i32_0 : i32, i32
  }
  func.func @transform_10(%arg0: i32, %arg1: i32) -> (i32, i32, i32) {
    %c0_i32 = arith.constant 0 : i32
    %c0_i32_0 = arith.constant 0 : i32
    return %arg0, %arg1, %c0_i32 : i32, i32, i32
  }
  func.func @transform_11(%arg0: i32, %arg1: i32) -> (i32, i32, i32) {
    %c0_i32 = arith.constant 0 : i32
    %c0_i32_0 = arith.constant 0 : i32
    %c0_i32_1 = arith.constant 0 : i32
    return %arg0, %c0_i32, %c0_i32_0 : i32, i32, i32
  }
}

</mosaic_0001>

<bundles_post_ra>
// kernel: tpu_custom_call.1
= control target key start
LH: loop header
LB: loop body
LE: loop exit
PB: predicated region body
PF: predicated region fallthrough
CT: control target
= control target key end

     0   :  { %17 = vsyncpa [#allocation4], 0  ;;  %s1041_s0 = inlined_call_operand.hbm [shape: f32[1,8,128], index: 0, kind: input, shape index: {}]   ;;  %s1042_s1 = inlined_call_operand.hbm [shape: f32[1,8,128], index: 1, kind: input, shape index: {}]   ;;  %s1043_s2 = inlined_call_operand.hbm [shape: f32[128,128], index: 2, kind: input, shape index: {}]   ;;  %s1044_s3 = inlined_call_operand.hbm [shape: f32[1,128], index: 3, kind: input, shape index: {}]   ;;  %s1045_s4 = inlined_call_operand.hbm [shape: f32[256,512], index: 4, kind: input, shape index: {}]   ;;  %s1046_s5 = inlined_call_operand.vmem [shape: f32[1,512], index: 5, kind: input, shape index: {}]   ;;  %s1047_s6 = inlined_call_operand.hbm [shape: f32[128,128], index: 6, kind: input, shape index: {}]   ;;  %s1048_s7 = inlined_call_operand.vmem [shape: f32[1,128], index: 7, kind: input, shape index: {}]   ;;  %s1049_s8 = inlined_call_operand.hbm [shape: f32[128,128], index: 8, kind: input, shape index: {}]   ;;  %s1050_s9 = inlined_call_operand.vmem [shape: f32[1,128], index: 9, kind: input, shape index: {}]   ;;  %s1051_s10 = inlined_call_operand.hbm [shape: f32[1,8,128], index: 10, kind: output, shape index: {0}]   ;;  %s1052_s11 = inlined_call_operand.hbm [shape: f32[1,8,128], index: 11, kind: output, shape index: {1}]  }
   0x1   :  { %18 = vsyncpa [#allocation7], 0 }
   0x2   :  { %19 = vsyncpa [#allocation10], 0 }
   0x3   :  { %20 = vsyncpa [#allocation13], 0 }
   0x4   :  { %21 = vsyncpa [#allocation5], 0  ;;  %s39_s19 = sshll.u32 %s1042_s1, 4  ;;  %s40_s19 = int_to_ptr.hbm [resolvable:$true] %s39_s19 }
   0x5   :  { %22 = vsyncpa [#allocation17], 0  ;;  %s910_s20 = smov [#allocation6]   ;;  %s63_s24 = sshll.u32 %s1044_s3, 4  ;;  %s64_s24 = int_to_ptr.hbm [resolvable:$true] %s63_s24 }
   0x6   :  { %s41_s21 = sshll.u32 %s910_s20, 4  ;;  %s911_s25 = smov [#allocation9]   ;;  %s42_s21 = int_to_ptr.vmem [resolvable:$true] %s41_s21 }
   0x7   :  { %44 = dma.hbm_to_vmem [thread:$0]  %s40_s19, 128, %s42_s21, [#allocation7]  }
   0x8   :  { %s65_s26 = sshll.u32 %s911_s25, 4  ;;  %s88_s29 = sshll.u32 %s1047_s6, 4  ;;  %s66_s26 = int_to_ptr.vmem [resolvable:$true] %s65_s26  ;;  %s89_s29 = int_to_ptr.hbm [resolvable:$true] %s88_s29 }
   0x9   :  { %68 = dma.hbm_to_vmem [thread:$0]  %s64_s24, 16, %s66_s26, [#allocation10]  }
   0xa   :  { %s912_s1 = smov [#allocation12]   ;;  %s28_s14 = sshll.u32 %s1041_s0, 4  ;;  %s29_s14 = int_to_ptr.hbm [resolvable:$true] %s28_s14 }
   0xb   :  { %s90_s30 = sshll.u32 %s912_s1, 4  ;;  %s913_s15 = smov 128   ;;  %s91_s30 = int_to_ptr.vmem [resolvable:$true] %s90_s30 }
   0xc   :  { %s914_s3 = smov 8   ;;  %s915_s16 = smov [#allocation3]  }
   0xd   :  { %96 = dma.hbm_to_vmem [thread:$0]  %s89_s29, 2048, %s91_s30, [#allocation13], %s913_s15, %s913_s15, %s914_s3  }
   0xe   :  { %s30_s17 = sshll.u32 %s915_s16, 4  ;;  %s49_s6 = sshll.u32 %s1043_s2, 4  ;;  %s31_s17 = int_to_ptr.vmem [resolvable:$true] %s30_s17  ;;  %s50_s6 = int_to_ptr.hbm [resolvable:$true] %s49_s6 }
   0xf   :  { %33 = dma.hbm_to_vmem [thread:$0]  %s29_s14, 128, %s31_s17, [#allocation4]  }
  0x10   :  { %s73_s0 = sshll.u32 %s1045_s4, 4  ;;  %s916_s22 = smov [#allocation8]   ;;  %s74_s0 = int_to_ptr.hbm [resolvable:$true] %s73_s0 }
  0x11   :  { %s51_s23 = sshll.u32 %s916_s22, 4  ;;  %s917_s24 = smov [#allocation11]   ;;  %s52_s23 = int_to_ptr.vmem [resolvable:$true] %s51_s23 }
  0x12   :  { %57 = dma.hbm_to_vmem [thread:$0]  %s50_s6, 2048, %s52_s23, [#allocation7], %s913_s15, %s913_s15, %s914_s3  }
  0x13   :  { %s75_s25 = sshll.u32 %s917_s24, 4  ;;  %s918_s26 = smov 512   ;;  %s76_s25 = int_to_ptr.vmem [resolvable:$true] %s75_s25 }
  0x14   :  { %s919_s2 = smov 32   ;;  %s103_s29 = sshll.u32 %s1049_s8, 4  ;;  %s104_s29 = int_to_ptr.hbm [resolvable:$true] %s103_s29 }
  0x15   :  { %81 = dma.hbm_to_vmem [thread:$0]  %s74_s0, 16384, %s76_s25, [#allocation10], %s918_s26, %s918_s26, %s919_s2  }
  0x16   :  { %s920_s4 = smov [#allocation14]  }
  0x17   :  { %s105_s1 = sshll.u32 %s920_s4, 4  ;;  %s106_s1 = int_to_ptr.vmem [resolvable:$true] %s105_s1 }
  0x18   :  { %111 = dma.hbm_to_vmem [thread:$0]  %s104_s29, 2048, %s106_s1, [#allocation13], %s913_s15, %s913_s15, %s914_s3  }
  0x19   :  { %898 = dma.done.wait [#allocation4], 128  }
  0x1a   :  { %899 = vsyncadd [#allocation4], 4294967168 }
  0x1b   :  { %900 = dma.done.wait [#allocation7], 2176  }
  0x1c   :  { %901 = vsyncadd [#allocation7], 4294965120 }
  0x1d   :  { %902 = dma.done.wait [#allocation10], 16400  }
  0x1e   :  { %903 = vsyncadd [#allocation10], 4294950896 }
  0x1f   :  { %904 = dma.done.wait [#allocation13], 4096  }
  0x20   :  { %905 = vsyncadd [#allocation13], 4294963200  ;;  %v164_v0 = vld [vmem:[#allocation8 + $0x78] sm:$0xff]  ;;  %v163_v1 = vld [vmem:[#allocation8 + $0x70] sm:$0xff]  ;;  %s921_s13 = smov [#allocation16]   ;;  %s636_s16 = sshll.u32 %s1052_s11, 4  ;;  %s637_s16 = int_to_ptr.hbm [resolvable:$true] %s636_s16 }
  0x21   :  { %169 = vmatpush.msra.mxu0 %v164_v0  ;;  %v162_v2 = vld [vmem:[#allocation8 + $0x68] sm:$0xff]  ;;  %v161_v3 = vld [vmem:[#allocation8 + $0x60] sm:$0xff]  ;;  %v160_v5 = vld [vmem:[#allocation8 + $0x58] sm:$0xff]  ;;  %s634_s14 = sshll.u32 %s921_s13, 4  ;;  %s922_s19 = smov [#allocation15]   ;;  %s635_s14 = int_to_ptr.vmem [resolvable:$true] %s634_s14 }
  0x22   :  { %v314_v4 = vld [vmem:[#allocation11 + $0x3e0] sm:$0xff]  ;;  %v251_v9 = vld [vmem:[#allocation11 + $0x1e8] sm:$0xff]  ;;  %v156_v24 = vld [vmem:[#allocation8 + $0x38] sm:$0xff]  ;;  %s623_s6 = sshll.u32 %s922_s19, 4  ;;  %s625_s21 = sshll.u32 %s1051_s10, 4  ;;  %s624_s6 = int_to_ptr.vmem [resolvable:$true] %s623_s6  ;;  %s626_s21 = int_to_ptr.hbm [resolvable:$true] %s625_s21 }
  0x23   :  { %170 = vmatpush.msra.mxu0 %v163_v1  ;;  %349 = vmatpush.msra.mxu2 %v314_v4  ;;  %v310_v6 = vld [vmem:[#allocation11 + $0x3c0] sm:$0xff]  ;;  %v159_v11 = vld [vmem:[#allocation8 + $0x50] sm:$0xff]  ;;  %v152_v40 = vld [vmem:[#allocation8 + $0x18] sm:$0xff] }
  0x24   :  { %v250_v7 = vld [vmem:[#allocation11 + $0x1e0] sm:$0xff]  ;;  %369 = vmatpush.msra.mxu3 %v251_v9  ;;  %v247_v12 = vld [vmem:[#allocation11 + $0x1c8] sm:$0xff]  ;;  %v316_v1 = vld [vmem:[#allocation11 + $0x3f0] sm:$0xff] }
  0x25   :  { %171 = vmatpush.msra.mxu0 %v162_v2  ;;  %329 = vmatpush.msra.mxu1 %v250_v7  ;;  %v306_v8 = vld [vmem:[#allocation11 + $0x3a0] sm:$0xff]  ;;  %v243_v15 = vld [vmem:[#allocation11 + $0x1a8] sm:$0xff]  ;;  %v252_v7 = vld [vmem:[#allocation11 + $0x1f0] sm:$0xff] }
  0x26   :  { %v246_v10 = vld [vmem:[#allocation11 + $0x1c0] sm:$0xff]  ;;  %350 = vmatpush.msra.mxu2 %v310_v6  ;;  %370 = vmatpush.msra.mxu3 %v247_v12  ;;  %v239_v19 = vld [vmem:[#allocation11 + $0x188] sm:$0xff]  ;;  %v308_v9 = vld [vmem:[#allocation11 + $0x3b0] sm:$0xff] }
  0x27   :  { %172 = vmatpush.msra.mxu0 %v161_v3  ;;  %v242_v13 = vld [vmem:[#allocation11 + $0x1a0] sm:$0xff]  ;;  %330 = vmatpush.msra.mxu1 %v246_v10  ;;  %v235_v23 = vld [vmem:[#allocation11 + $0x168] sm:$0xff]  ;;  %v253_v10 = vld [vmem:[#allocation11 + $0x1f8] sm:$0xff] }
  0x28   :  { %v302_v14 = vld [vmem:[#allocation11 + $0x380] sm:$0xff]  ;;  %351 = vmatpush.msra.mxu2 %v306_v8  ;;  %371 = vmatpush.msra.mxu3 %v243_v15  ;;  %v231_v27 = vld [vmem:[#allocation11 + $0x148] sm:$0xff]  ;;  %v244_v15 = vld [vmem:[#allocation11 + $0x1b0] sm:$0xff] }
  0x29   :  { %173 = vmatpush.msra.mxu0 %v160_v5  ;;  %v158_v16 = vld [vmem:[#allocation8 + $0x48] sm:$0xff]  ;;  %331 = vmatpush.msra.mxu1 %v242_v13  ;;  %v157_v20 = vld [vmem:[#allocation8 + $0x40] sm:$0xff]  ;;  %v155_v28 = vld [vmem:[#allocation8 + $0x30] sm:$0xff] }
  0x2a   :  { %v238_v17 = vld [vmem:[#allocation11 + $0x180] sm:$0xff]  ;;  %352 = vmatpush.msra.mxu2 %v302_v14  ;;  %372 = vmatpush.msra.mxu3 %v239_v19  ;;  %v227_v31 = vld [vmem:[#allocation11 + $0x128] sm:$0xff]  ;;  %v312_v5 = vld [vmem:[#allocation11 + $0x3d0] sm:$0xff] }
  0x2b   :  { %174 = vmatpush.msra.mxu0 %v159_v11  ;;  %v298_v18 = vld [vmem:[#allocation11 + $0x360] sm:$0xff]  ;;  %332 = vmatpush.msra.mxu1 %v238_v17  ;;  %v223_v35 = vld [vmem:[#allocation11 + $0x108] sm:$0xff]  ;;  %v248_v11 = vld [vmem:[#allocation11 + $0x1d0] sm:$0xff] }
  0x2c   :  { %v234_v21 = vld [vmem:[#allocation11 + $0x160] sm:$0xff]  ;;  %353 = vmatpush.msra.mxu2 %v298_v18  ;;  %373 = vmatpush.msra.mxu3 %v235_v23  ;;  %v219_v39 = vld [vmem:[#allocation11 + $0xe8] sm:$0xff]  ;;  %v304_v13 = vld [vmem:[#allocation11 + $0x390] sm:$0xff] }
  0x2d   :  { %175 = vmatpush.msra.mxu0 %v158_v16  ;;  %v294_v22 = vld [vmem:[#allocation11 + $0x340] sm:$0xff]  ;;  %333 = vmatpush.msra.mxu1 %v234_v21  ;;  %v215_v43 = vld [vmem:[#allocation11 + $0xc8] sm:$0xff]  ;;  %v249_v14 = vld [vmem:[#allocation11 + $0x1d8] sm:$0xff] }
  0x2e   :  { %v230_v25 = vld [vmem:[#allocation11 + $0x140] sm:$0xff]  ;;  %354 = vmatpush.msra.mxu2 %v294_v22  ;;  %374 = vmatpush.msra.mxu3 %v231_v27  ;;  %v151_v44 = vld [vmem:[#allocation8 + $0x10] sm:$0xff]  ;;  %v245_v18 = vld [vmem:[#allocation11 + $0x1b8] sm:$0xff] }
  0x2f   :  { %176 = vmatpush.msra.mxu0 %v157_v20  ;;  %v290_v26 = vld [vmem:[#allocation11 + $0x320] sm:$0xff]  ;;  %334 = vmatpush.msra.mxu1 %v230_v25  ;;  %v211_v47 = vld [vmem:[#allocation11 + $0xa8] sm:$0xff]  ;;  %v300_v17 = vld [vmem:[#allocation11 + $0x370] sm:$0xff] }
  0x30   :  { %v226_v29 = vld [vmem:[#allocation11 + $0x120] sm:$0xff]  ;;  %355 = vmatpush.msra.mxu2 %v290_v26  ;;  %375 = vmatpush.msra.mxu3 %v227_v31  ;;  %v207_v51 = vld [vmem:[#allocation11 + $0x88] sm:$0xff]  ;;  %v240_v19 = vld [vmem:[#allocation11 + $0x190] sm:$0xff] }
  0x31   :  { %177 = vmatpush.msra.mxu0 %v156_v24  ;;  %v286_v30 = vld [vmem:[#allocation11 + $0x300] sm:$0xff]  ;;  %335 = vmatpush.msra.mxu1 %v226_v29  ;;  %v148_v54 = vld [vmem:[#allocation3] sm:$0xff]  ;;  %v241_v22 = vld [vmem:[#allocation11 + $0x198] sm:$0xff] }
  0x32   :  { %v154_v32 = vld [vmem:[#allocation8 + $0x28] sm:$0xff]  ;;  %v153_v36 = vld [vmem:[#allocation8 + $0x20] sm:$0xff]  ;;  %356 = vmatpush.msra.mxu2 %v286_v30  ;;  %376 = vmatpush.msra.mxu3 %v223_v35  ;;  %v296_v21 = vld [vmem:[#allocation11 + $0x350] sm:$0xff] }
  0x33   :  { %v222_v33 = vld [vmem:[#allocation11 + $0x100] sm:$0xff]  ;;  %178 = vmatpush.msra.mxu0 %v155_v28  ;;  %v315_v56 = vld [vmem:[#allocation11 + $0x3e8] sm:$0xff]  ;;  %v236_v23 = vld [vmem:[#allocation11 + $0x170] sm:$0xff] }
  0x34   :  { %v282_v34 = vld [vmem:[#allocation11 + $0x2e0] sm:$0xff]  ;;  %336 = vmatpush.msra.mxu1 %v222_v33  ;;  %377 = vmatpush.msra.mxu3 %v219_v39  ;;  %v203_v57 = vld [vmem:[#allocation11 + $0x68] sm:$0xff]  ;;  %v292_v25 = vld [vmem:[#allocation11 + $0x330] sm:$0xff] }
  0x35   :  { %v218_v37 = vld [vmem:[#allocation11 + $0xe0] sm:$0xff]  ;;  %179 = vmatpush.msra.mxu0 %v154_v32  ;;  %357 = vmatpush.msra.mxu2 %v282_v34  ;;  %v311_v60 = vld [vmem:[#allocation11 + $0x3c8] sm:$0xff]  ;;  %v237_v26 = vld [vmem:[#allocation11 + $0x178] sm:$0xff] }
  0x36   :  { %v278_v38 = vld [vmem:[#allocation11 + $0x2c0] sm:$0xff]  ;;  %337 = vmatpush.msra.mxu1 %v218_v37  ;;  %378 = vmatpush.msra.mxu3 %v215_v43  ;;  %v199_v61 = vld [vmem:[#allocation11 + $0x48] sm:$0xff]  ;;  %v232_v27 = vld [vmem:[#allocation11 + $0x150] sm:$0xff] }
  0x37   :  { %v214_v41 = vld [vmem:[#allocation11 + $0xc0] sm:$0xff]  ;;  %180 = vmatpush.msra.mxu0 %v153_v36  ;;  %358 = vmatpush.msra.mxu2 %v278_v38  ;;  %v307_v0 = vld [vmem:[#allocation11 + $0x3a8] sm:$0xff]  ;;  %v288_v29 = vld [vmem:[#allocation11 + $0x310] sm:$0xff] }
  0x38   :  { %v274_v42 = vld [vmem:[#allocation11 + $0x2a0] sm:$0xff]  ;;  %338 = vmatpush.msra.mxu1 %v214_v41  ;;  %379 = vmatpush.msra.mxu3 %v211_v47  ;;  %v195_v2 = vld [vmem:[#allocation11 + $0x28] sm:$0xff]  ;;  %v233_v30 = vld [vmem:[#allocation11 + $0x158] sm:$0xff] }
  0x39   :  { %v210_v45 = vld [vmem:[#allocation11 + $0xa0] sm:$0xff]  ;;  %181 = vmatpush.msra.mxu0 %v152_v40  ;;  %359 = vmatpush.msra.mxu2 %v274_v42  ;;  %v303_v4 = vld [vmem:[#allocation11 + $0x388] sm:$0xff]  ;;  %v228_v31 = vld [vmem:[#allocation11 + $0x130] sm:$0xff] }
  0x3a   :  { %v270_v46 = vld [vmem:[#allocation11 + $0x280] sm:$0xff]  ;;  %339 = vmatpush.msra.mxu1 %v210_v45  ;;  %380 = vmatpush.msra.mxu3 %v207_v51  ;;  %v191_v6 = vld [vmem:[#allocation11 + $0x8] sm:$0xff]  ;;  %v284_v33 = vld [vmem:[#allocation11 + $0x2f0] sm:$0xff] }
  0x3b   :  { %v150_v48 = vld [vmem:[#allocation8 + $0x8] sm:$0xff]  ;;  %182 = vmatpush.msra.mxu0 %v151_v44  ;;  %v149_v52 = vld [vmem:[#allocation8] sm:$0xff]  ;;  %360 = vmatpush.msra.mxu2 %v270_v46  ;;  %v224_v35 = vld [vmem:[#allocation11 + $0x110] sm:$0xff] }
  0x3c   :  { %v206_v49 = vld [vmem:[#allocation11 + $0x80] sm:$0xff]  ;;  %381 = vmatpush.msra.mxu3 %v203_v57  ;;  %v299_v8 = vld [vmem:[#allocation11 + $0x368] sm:$0xff]  ;;  %v229_v34 = vld [vmem:[#allocation11 + $0x138] sm:$0xff] }
  0x3d   :  { %v266_v50 = vld [vmem:[#allocation11 + $0x260] sm:$0xff]  ;;  %183 = vmatpush.msra.mxu0 %v150_v48  ;;  %340 = vmatpush.msra.mxu1 %v206_v49  ;;  %v295_v12 = vld [vmem:[#allocation11 + $0x348] sm:$0xff]  ;;  %v280_v37 = vld [vmem:[#allocation11 + $0x2d0] sm:$0xff] }
  0x3e   :  { %v202_v53 = vld [vmem:[#allocation11 + $0x60] sm:$0xff]  ;;  %361 = vmatpush.msra.mxu2 %v266_v50  ;;  %382 = vmatpush.msra.mxu3 %v199_v61  ;;  %v291_v16 = vld [vmem:[#allocation11 + $0x328] sm:$0xff]  ;;  %v225_v38 = vld [vmem:[#allocation11 + $0x118] sm:$0xff] }
  0x3f   :  { %v262_v55 = vld [vmem:[#allocation11 + $0x240] sm:$0xff]  ;;  %184 = vmatpush.msra.mxu0 %v149_v52  ;;  %341 = vmatpush.msra.mxu1 %v202_v53  ;;  %v287_v20 = vld [vmem:[#allocation11 + $0x308] sm:$0xff]  ;;  %v220_v39 = vld [vmem:[#allocation11 + $0xf0] sm:$0xff] }
  0x40   :  { %v258_v58 = vld [vmem:[#allocation11 + $0x220] sm:$0xff]  ;;  %185 = vmatmul.f32.vlgmr.msra.gmra.mxu0 %v148_v54  ;;  %362 = vmatpush.msra.mxu2 %v262_v55  ;;  %v283_v24 = vld [vmem:[#allocation11 + $0x2e8] sm:$0xff]  ;;  %v276_v41 = vld [vmem:[#allocation11 + $0x2b0] sm:$0xff] }
  0x41   :  { %v198_v59 = vld [vmem:[#allocation11 + $0x40] sm:$0xff]  ;;  %389 = vmatpush.msrb.mxu0 %v315_v56  ;;  %383 = vmatpush.msra.mxu3 %v195_v2  ;;  %v279_v28 = vld [vmem:[#allocation11 + $0x2c8] sm:$0xff]  ;;  %v221_v42 = vld [vmem:[#allocation11 + $0xf8] sm:$0xff] }
  0x42   :  { %v254_v62 = vld [vmem:[#allocation11 + $0x200] sm:$0xff]  ;;  %363 = vmatpush.msra.mxu2 %v258_v58  ;;  %342 = vmatpush.msra.mxu1 %v198_v59  ;;  %v275_v32 = vld [vmem:[#allocation11 + $0x2a8] sm:$0xff]  ;;  %v317_v46 = vld [vmem:[#allocation11 + $0x3f8] sm:$0xff] }
  0x43   :  { %v194_v63 = vld [vmem:[#allocation11 + $0x20] sm:$0xff]  ;;  %390 = vmatpush.msrb.mxu0 %v311_v60  ;;  %384 = vmatpush.msra.mxu3 %v191_v6  ;;  %v271_v36 = vld [vmem:[#allocation11 + $0x288] sm:$0xff]  ;;  %v313_v47 = vld [vmem:[#allocation11 + $0x3d8] sm:$0xff] }
  0x44   :  { %v190_v3 = vld [vmem:[#allocation11] sm:$0xff]  ;;  %364 = vmatpush.msra.mxu2 %v254_v62  ;;  %343 = vmatpush.msra.mxu1 %v194_v63  ;;  %v267_v40 = vld [vmem:[#allocation11 + $0x268] sm:$0xff]  ;;  %v309_v48 = vld [vmem:[#allocation11 + $0x3b8] sm:$0xff] }
  0x45   :  { %391 = vmatpush.msrb.mxu0 %v307_v0  ;;  %449 = vmatpush.msrb.mxu3 %v253_v10  ;;  %v263_v43 = vld [vmem:[#allocation11 + $0x248] sm:$0xff]  ;;  %v305_v49 = vld [vmem:[#allocation11 + $0x398] sm:$0xff]  ;;  %v216_v51 = vld [vmem:[#allocation11 + $0xd0] sm:$0xff] }
  0x46   :  { %429 = vmatpush.msrb.mxu2 %v316_v1  ;;  %344 = vmatpush.msra.mxu1 %v190_v3  ;;  %v259_v44 = vld [vmem:[#allocation11 + $0x228] sm:$0xff]  ;;  %v301_v50 = vld [vmem:[#allocation11 + $0x378] sm:$0xff]  ;;  %v272_v52 = vld [vmem:[#allocation11 + $0x290] sm:$0xff] }
  0x47   :  { %392 = vmatpush.msrb.mxu0 %v303_v4  ;;  %450 = vmatpush.msrb.mxu3 %v249_v14  ;;  %v255_v45 = vld [vmem:[#allocation11 + $0x208] sm:$0xff]  ;;  %v217_v53 = vld [vmem:[#allocation11 + $0xd8] sm:$0xff]  ;;  %v212_v56 = vld [vmem:[#allocation11 + $0xb0] sm:$0xff] }
  0x48   :  { %430 = vmatpush.msrb.mxu2 %v312_v5  ;;  %409 = vmatpush.msrb.mxu1 %v252_v7  ;;  %v297_v54 = vld [vmem:[#allocation11 + $0x358] sm:$0xff]  ;;  %v268_v57 = vld [vmem:[#allocation11 + $0x270] sm:$0xff] }
  0x49   :  { %393 = vmatpush.msrb.mxu0 %v299_v8  ;;  %451 = vmatpush.msrb.mxu3 %v245_v18  ;;  %v1013_v55 = vld [vmem:[#allocation6] sm:$0xff]  ;;  %v669_v18 = vld [vmem:[#allocation9] ss:$0 sm:$0xff] }
  0x4a   :  { %431 = vmatpush.msrb.mxu2 %v308_v9  ;;  %410 = vmatpush.msrb.mxu1 %v248_v11  ;;  %v213_v58 = vld [vmem:[#allocation11 + $0xb8] sm:$0xff]  ;;  %v208_v60 = vld [vmem:[#allocation11 + $0x90] sm:$0xff] }
  0x4b   :  { %394 = vmatpush.msrb.mxu0 %v295_v12  ;;  %452 = vmatpush.msrb.mxu3 %v241_v22  ;;  %v293_v59 = vld [vmem:[#allocation11 + $0x338] sm:$0xff]  ;;  %v264_v61 = vld [vmem:[#allocation11 + $0x250] sm:$0xff] }
  0x4c   :  { %432 = vmatpush.msrb.mxu2 %v304_v13  ;;  %411 = vmatpush.msrb.mxu1 %v244_v15  ;;  %v209_v62 = vld [vmem:[#allocation11 + $0x98] sm:$0xff]  ;;  %v204_v0 = vld [vmem:[#allocation11 + $0x70] sm:$0xff] }
  0x4d   :  { %395 = vmatpush.msrb.mxu0 %v291_v16  ;;  %453 = vmatpush.msrb.mxu3 %v237_v26  ;;  %v289_v63 = vld [vmem:[#allocation11 + $0x318] sm:$0xff]  ;;  %v260_v1 = vld [vmem:[#allocation11 + $0x230] sm:$0xff] }
  0x4e   :  { %433 = vmatpush.msrb.mxu2 %v300_v17  ;;  %412 = vmatpush.msrb.mxu1 %v240_v19  ;;  %v205_v2 = vld [vmem:[#allocation11 + $0x78] sm:$0xff]  ;;  %v200_v4 = vld [vmem:[#allocation11 + $0x50] sm:$0xff] }
  0x4f   :  { %396 = vmatpush.msrb.mxu0 %v287_v20  ;;  %454 = vmatpush.msrb.mxu3 %v233_v30  ;;  %v285_v3 = vld [vmem:[#allocation11 + $0x2f8] sm:$0xff]  ;;  %v256_v5 = vld [vmem:[#allocation11 + $0x210] sm:$0xff] }
  0x50   :  { %434 = vmatpush.msrb.mxu2 %v296_v21  ;;  %413 = vmatpush.msrb.mxu1 %v236_v23  ;;  %v201_v6 = vld [vmem:[#allocation11 + $0x58] sm:$0xff]  ;;  %v196_v8 = vld [vmem:[#allocation11 + $0x30] sm:$0xff] }
  0x51   :  { %397 = vmatpush.msrb.mxu0 %v283_v24  ;;  %455 = vmatpush.msrb.mxu3 %v229_v34  ;;  %v281_v7 = vld [vmem:[#allocation11 + $0x2d8] sm:$0xff]  ;;  %v192_v11 = vld [vmem:[#allocation11 + $0x10] sm:$0xff]  ;;  %v549_v24 = vld [vmem:[#allocation12 + $0x68] sm:$0xff] }
  0x52   :  { %435 = vmatpush.msrb.mxu2 %v292_v25  ;;  %414 = vmatpush.msrb.mxu1 %v232_v27  ;;  %v197_v9 = vld [vmem:[#allocation11 + $0x38] sm:$0xff]  ;;  %v550_v23 = vld [vmem:[#allocation12 + $0x70] sm:$0xff]  ;;  %v548_v25 = vld [vmem:[#allocation12 + $0x60] sm:$0xff] }
  0x53   :  { %398 = vmatpush.msrb.mxu0 %v279_v28  ;;  %456 = vmatpush.msrb.mxu3 %v225_v38  ;;  %v277_v10 = vld [vmem:[#allocation11 + $0x2b8] sm:$0xff]  ;;  %v1022_v27 = vld [vmem:[%s1046_s5] sm:$0xf] }
  0x54   :  { %436 = vmatpush.msrb.mxu2 %v288_v29  ;;  %415 = vmatpush.msrb.mxu1 %v228_v31  ;;  %v193_v12 = vld [vmem:[#allocation11 + $0x18] sm:$0xff]  ;;  %v546_v28 = vld [vmem:[#allocation12 + $0x50] sm:$0xff]  ;;  %v545_v29 = vld [vmem:[#allocation12 + $0x48] sm:$0xff]  ;;  %v321_v30 = vperm.slane %v1022_v27, 0  ;;  %v322_v38 = vperm.slane %v1022_v27, 1 }
  0x55   :  { %399 = vmatpush.msrb.mxu0 %v275_v32  ;;  %457 = vmatpush.msrb.mxu3 %v221_v42  ;;  %v273_v13 = vld [vmem:[#allocation11 + $0x298] sm:$0xff]  ;;  %v544_v31 = vld [vmem:[#allocation12 + $0x40] sm:$0xff] }
  0x56   :  { %437 = vmatpush.msrb.mxu2 %v284_v33  ;;  %416 = vmatpush.msrb.mxu1 %v224_v35  ;;  %v269_v14 = vld [vmem:[#allocation11 + $0x278] sm:$0xff] }
  0x57   :  { %400 = vmatpush.msrb.mxu0 %v271_v36  ;;  %458 = vmatpush.msrb.mxu3 %v217_v53  ;;  %v265_v15 = vld [vmem:[#allocation11 + $0x258] sm:$0xff]  ;;  %v542_v36 = vld [vmem:[#allocation12 + $0x30] sm:$0xff] }
  0x58   :  { %438 = vmatpush.msrb.mxu2 %v280_v37  ;;  %417 = vmatpush.msrb.mxu1 %v220_v39  ;;  %v261_v16 = vld [vmem:[#allocation11 + $0x238] sm:$0xff]  ;;  %v541_v39 = vld [vmem:[#allocation12 + $0x28] sm:$0xff] }
  0x59   :  { %401 = vmatpush.msrb.mxu0 %v267_v40  ;;  %365 = vmatmul.f32.vlgmr.msra.gmra.mxu2 %v1013_v55  ;;  %v257_v17 = vld [vmem:[#allocation11 + $0x218] sm:$0xff] }
  0x5a   :  { %439 = vmatpush.msrb.mxu2 %v276_v41  ;;  %418 = vmatpush.msrb.mxu1 %v216_v51  ;;  %v551_v22 = vld [vmem:[#allocation12 + $0x78] sm:$0xff]  ;;  %v540_v41 = vld [vmem:[#allocation12 + $0x20] sm:$0xff] }
  0x5b   :  { %402 = vmatpush.msrb.mxu0 %v263_v43  ;;  %459 = vmatpush.msrb.mxu3 %v213_v58  ;;  %v547_v26 = vld [vmem:[#allocation12 + $0x58] sm:$0xff] }
  0x5c   :  { %440 = vmatpush.msrb.mxu2 %v272_v52  ;;  %419 = vmatpush.msrb.mxu1 %v212_v56  ;;  %v543_v34 = vld [vmem:[#allocation12 + $0x38] sm:$0xff]  ;;  %v590_v56 = vld [vmem:[#allocation14 + $0x68] sm:$0xff] }
  0x5d   :  { %403 = vmatpush.msrb.mxu0 %v259_v44  ;;  %460 = vmatpush.msrb.mxu3 %v209_v62  ;;  %v539_v44 = vld [vmem:[#allocation12 + $0x18] sm:$0xff]  ;;  %v324_v62 = vperm.slane %v1022_v27, 3 }
  0x5e   :  { %441 = vmatpush.msrb.mxu2 %v268_v57  ;;  %420 = vmatpush.msrb.mxu1 %v208_v60  ;;  %v592_v53 = vld [vmem:[#allocation14 + $0x78] sm:$0xff] }
  0x5f   :  { %404 = vmatpush.msrb.mxu0 %v255_v45  ;;  %461 = vmatpush.msrb.mxu3 %v205_v2  ;;  %v587_v2 = vld [vmem:[#allocation14 + $0x50] sm:$0xff] }
  0x60   :  { %442 = vmatpush.msrb.mxu2 %v264_v61  ;;  %421 = vmatpush.msrb.mxu1 %v204_v0  ;;  %v588_v61 = vld [vmem:[#allocation14 + $0x58] sm:$0xff]  ;;  %v323_v0 = vperm.slane %v1022_v27, 2 }
  0x61   :  { %469 = vmatpush.msra.mxu0 %v317_v46  ;;  %462 = vmatpush.msrb.mxu3 %v201_v6  ;;  %v538_v46 = vld [vmem:[#allocation12 + $0x10] sm:$0xff]  ;;  %v586_v6 = vld [vmem:[#allocation14 + $0x48] sm:$0xff] }
  0x62   :  { %443 = vmatpush.msrb.mxu2 %v260_v1  ;;  %422 = vmatpush.msrb.mxu1 %v200_v4 }
  0x63   :  { %470 = vmatpush.msra.mxu0 %v313_v47  ;;  %463 = vmatpush.msrb.mxu3 %v197_v9 }
  0x64   :  { %444 = vmatpush.msrb.mxu2 %v256_v5  ;;  %423 = vmatpush.msrb.mxu1 %v196_v8 }
  0x65   :  { %471 = vmatpush.msra.mxu0 %v309_v48  ;;  %445 = vmatmul.f32.vlgmr.msrb.gmra.mxu2 %v1013_v55  ;;  %v537_v48 = vld [vmem:[#allocation12 + $0x8] sm:$0xff] }
  0x66   :  { %424 = vmatpush.msrb.mxu1 %v192_v11  ;;  %464 = vmatpush.msrb.mxu3 %v193_v12 }
  0x67   :  { %472 = vmatpush.msra.mxu0 %v305_v49  ;;  %597 = vmatpush.msra.mxu2 %v592_v53 }
  0x68   :  { %405 = vmatmul.f32.vlgmr.msrb.gmra.mxu0 %v1013_v55 }
  0x69   :  { %473 = vmatpush.msra.mxu0 %v301_v50  ;;  %v536_v50 = vld [vmem:[#allocation12] sm:$0xff] }
  0x6b   :  { %474 = vmatpush.msra.mxu0 %v297_v54  ;;  %v591_v54 = vld [vmem:[#allocation14 + $0x70] sm:$0xff] }
  0x6c   :  { %598 = vmatpush.msra.mxu2 %v591_v54 }
  0x6d   :  { %475 = vmatpush.msra.mxu0 %v293_v59  ;;  %v589_v59 = vld [vmem:[#allocation14 + $0x60] sm:$0xff] }
  0x6e   :  { %599 = vmatpush.msra.mxu2 %v590_v56 }
  0x6f   :  { %476 = vmatpush.msra.mxu0 %v289_v63 }
  0x70   :  { %600 = vmatpush.msra.mxu2 %v589_v59 }
  0x71   :  { %477 = vmatpush.msra.mxu0 %v285_v3 }
  0x72   :  { %601 = vmatpush.msra.mxu2 %v588_v61 }
  0x73   :  { %478 = vmatpush.msra.mxu0 %v281_v7 }
  0x74   :  { %602 = vmatpush.msra.mxu2 %v587_v2 }
  0x75   :  { %479 = vmatpush.msra.mxu0 %v277_v10 }
  0x76   :  { %603 = vmatpush.msra.mxu2 %v586_v6 }
  0x77   :  { %480 = vmatpush.msra.mxu0 %v273_v13  ;;  %v585_v13 = vld [vmem:[#allocation14 + $0x40] sm:$0xff] }
  0x78   :  { %604 = vmatpush.msra.mxu2 %v585_v13 }
  0x79   :  { %481 = vmatpush.msra.mxu0 %v269_v14 }
  0x7b   :  { %482 = vmatpush.msra.mxu0 %v265_v15 }
  0x7d   :  { %483 = vmatpush.msra.mxu0 %v261_v16 }
  0x7f   :  { %484 = vmatpush.msra.mxu0 %v257_v17 }
  0x80   :  { %485 = vmatmul.f32.vlgmr.msra.gmra.mxu0 %v1013_v55 }
  0xbd   :  { %v186_v19 = vpop.f32.mrf.mxu0 }
  0xbe   :  { %v187_v20 = vadd.f32 %v669_v18, %v186_v19  ;;  %v584_v18 = vld [vmem:[#allocation14 + $0x38] sm:$0xff] }
  0xbf   :  { %605 = vmatpush.msra.mxu2 %v584_v18 }
  0xc0   :  { %v189_v21 = vmax.f32 %v187_v20, 0.0 }
  0xc2   :  { %345 = vmatmul.f32.vlgmr.msra.gmra.mxu1 %v189_v21  ;;  %385 = vmatmul.f32.vlgmr.msra.gmra.mxu3 %v189_v21 }
  0xc3   :  { %556 = vmatpush.msra.mxu1 %v551_v22 }
  0xc5   :  { %557 = vmatpush.msra.mxu1 %v550_v23 }
  0xc7   :  { %558 = vmatpush.msra.mxu1 %v549_v24  ;;  %v583_v24 = vld [vmem:[#allocation14 + $0x30] sm:$0xff] }
  0xc8   :  { %606 = vmatpush.msra.mxu2 %v583_v24 }
  0xc9   :  { %559 = vmatpush.msra.mxu1 %v548_v25 }
  0xca   :  { %425 = vmatmul.f32.vlgmr.msrb.gmra.mxu1 %v189_v21  ;;  %465 = vmatmul.f32.vlgmr.msrb.gmra.mxu3 %v189_v21 }
  0xcb   :  { %560 = vmatpush.msra.mxu1 %v547_v26 }
  0xcd   :  { %561 = vmatpush.msra.mxu1 %v546_v28 }
  0xcf   :  { %562 = vmatpush.msra.mxu1 %v545_v29  ;;  %v582_v29 = vld [vmem:[#allocation14 + $0x28] sm:$0xff] }
  0xd0   :  { %607 = vmatpush.msra.mxu2 %v582_v29 }
  0xd1   :  { %563 = vmatpush.msra.mxu1 %v544_v31 }
  0xd3   :  { %564 = vmatpush.msra.mxu1 %v543_v34 }
  0xd5   :  { %565 = vmatpush.msra.mxu1 %v542_v36 }
  0xd7   :  { %566 = vmatpush.msra.mxu1 %v541_v39 }
  0xd9   :  { %567 = vmatpush.msra.mxu1 %v540_v41 }
  0xdb   :  { %568 = vmatpush.msra.mxu1 %v539_v44  ;;  %v577_v44 = vld [vmem:[#allocation14] sm:$0xff] }
  0xdc   :  { %v366_v33 = vpop.f32.mrf.mxu2 }
  0xdd   :  { %569 = vmatpush.msra.mxu1 %v538_v46 }
  0xdf   :  { %570 = vmatpush.msra.mxu1 %v537_v48 }
  0xe1   :  { %571 = vmatpush.msra.mxu1 %v536_v50 }
  0xe5   :  { %v406_v43 = vpop.f32.mrf.mxu0 }
  0xe8   :  { %v446_v15 = vpop.f32.mrf.mxu2 }
  0xfd   :  { %v486_v12 = vpop.f32.mrf.mxu0 }
 0x13f   :  { %v346_v32 = vpop.f32.mrf.mxu1 }
 0x140   :  { %v347_v35 = vadd.f32 %v346_v32, %v321_v30  ;;  %v581_v32 = vld [vmem:[#allocation14 + $0x20] sm:$0xff] }
 0x141   :  { %608 = vmatpush.msra.mxu2 %v581_v32 }
 0x142   :  { %v367_v37 = vadd.f32 %v366_v33, %v347_v35  ;;  %v580_v35 = vld [vmem:[#allocation14 + $0x18] sm:$0xff] }
 0x143   :  { %609 = vmatpush.msra.mxu2 %v580_v35 }
 0x144   :  { %v654_v40 = vmul.f32 -1.442695, %v367_v37 }
 0x145   :  { %v386_v42 = vpop.f32.mrf.mxu3 }
 0x146   :  { %672 = vpow2.f32 %v654_v40  ;;  %v387_v45 = vadd.f32 %v386_v42, %v322_v38  ;;  %v579_v42 = vld [vmem:[#allocation14 + $0x10] sm:$0xff] }
 0x147   :  { %v426_v3 = vpop.f32.mrf.mxu1  ;;  %610 = vmatpush.msra.mxu2 %v579_v42 }
 0x148   :  { %v407_v47 = vadd.f32 %v406_v43, %v387_v45  ;;  %v427_v11 = vadd.f32 %v426_v3, %v323_v0  ;;  %v578_v43 = vld [vmem:[#allocation14 + $0x8] sm:$0xff] }
 0x149   :  { %611 = vmatpush.msra.mxu2 %v578_v43  ;;  %v670_v45 = vld [vmem:[%s1048_s7] ss:$0 sm:$0xff] }
 0x14a   :  { %v655_v49 = vmul.f32 -1.442695, %v407_v47  ;;  %v447_v22 = vadd.f32 %v446_v15, %v427_v11 }
 0x14b   :  { %612 = vmatpush.msra.mxu2 %v577_v44 }
 0x14c   :  { %v673_v51 = vpop.eup %672  ;;  %674 = vpow2.f32 %v655_v49 }
 0x14d   :  { %v492_v52 = vadd.f32 1.0, %v673_v51  ;;  %v466_v1 = vpop.f32.mrf.mxu3 }
 0x14e   :  { %v467_v7 = vadd.f32 %v466_v1, %v324_v62 }
 0x14f   :  { %676 = vrcp.f32 %v492_v52  ;;  %v504_v5 = vand.u32 2147483648, %v492_v52  ;;  %v502_v9 = vand.u32 2147483647, %v492_v52  ;;  %vm498_vm1 = vweird.f32 %v492_v52 }
 0x150   :  { %v487_v20 = vadd.f32 %v486_v12, %v467_v7 }
 0x151   :  { %v505_v17 = vor.u32 1.1754944e-38, %v504_v5  ;;  %vm503_vm3 = vcmp.eq.f32.partialorder %v502_v9, 8.507059e+37 }
 0x152   :  { %v675_v57 = vpop.eup %674 }
 0x153   :  { %v511_v58 = vadd.f32 1.0, %v675_v57 }
 0x155   :  { %v677_v60 = vpop.eup %676  ;;  %678 = vrcp.f32 %v511_v58  ;;  %v523_v27 = vand.u32 2147483648, %v511_v58  ;;  %v521_v28 = vand.u32 2147483647, %v511_v58  ;;  %vm517_vm5 = vweird.f32 %v511_v58 }
 0x156   :  { %v494_v63 = vmul.f32 %v677_v60, %v492_v52  ;;  %vm499_vm0 = vweird.f32 %v677_v60 }
 0x157   :  { %vm500_vm2 = vmor %vm498_vm1, %vm499_vm0  ;;  %v524_v34 = vor.u32 1.1754944e-38, %v523_v27  ;;  %vm522_vm7 = vcmp.eq.f32.partialorder %v521_v28, 8.507059e+37 }
 0x158   :  { %v495_v4 = vsub.f32 1.0, %v494_v63 }
 0x15a   :  { %v496_v8 = vmul.f32 %v677_v60, %v495_v4 }
 0x15b   :  { %v679_v10 = vpop.eup %678 }
 0x15c   :  { %v513_v14 = vmul.f32 %v679_v10, %v511_v58  ;;  %v497_v16 = vadd.f32 %v677_v60, %v496_v8  ;;  %vm518_vm4 = vweird.f32 %v679_v10 }
 0x15d   :  { %vm519_vm6 = vmor %vm517_vm5, %vm518_vm4 }
 0x15e   :  { %v514_v19 = vsub.f32 1.0, %v513_v14  ;;  %v501_v21 = vsel %vm500_vm2, %v677_v60, %v497_v16 }
 0x15f   :  { %v506_v23 = vsel %vm503_vm3, %v505_v17, %v501_v21 }
 0x160   :  { %v515_v25 = vmul.f32 %v679_v10, %v514_v19  ;;  %v527_v26 = vmul.f32 %v506_v23, %v487_v20 }
 0x162   :  { %v528_v30 = vadd.f32 %v527_v26, %v447_v22  ;;  %v516_v31 = vadd.f32 %v679_v10, %v515_v25 }
 0x164   :  { %680 = vtanh.f32 %v528_v30  ;;  %v520_v33 = vsel %vm519_vm6, %v679_v10, %v516_v31 }
 0x165   :  { %v525_v36 = vsel %vm522_vm7, %v524_v34, %v520_v33 }
 0x166   :  { %v530_v37 = vsub.f32 1.0, %v525_v36  ;;  %v532_v40 = vmul.f32 %v525_v36, %v1013_v55  ;;  %v671_v55 = vld [vmem:[%s1050_s9] ss:$0 sm:$0xff] }
 0x16a   :  { %v681_v38 = vpop.eup %680 }
 0x16b   :  { %v531_v39 = vmul.f32 %v681_v38, %v530_v37 }
 0x16d   :  { %v533_v41 = vadd.f32 %v532_v40, %v531_v39 }
 0x16f   :  { %572 = vmatmul.f32.vlgmr.msra.gmra.mxu1 %v533_v41  ;;  %535 = vst [vmem:[#allocation16] sm:$0xff] %v533_v41 }
 0x170   :  { %639 = dma.vmem_to_hbm [thread:$0]  %s635_s14, 128, %s637_s16, [#allocation17]  }
 0x1ec   :  { %v573_v46 = vpop.f32.mrf.mxu1 }
 0x1ed   :  { %v574_v47 = vadd.f32 %v670_v45, %v573_v46 }
 0x1ef   :  { %v576_v48 = vmax.f32 %v574_v47, 0.0 }
 0x1f1   :  { %613 = vmatmul.f32.vlgmr.msra.gmra.mxu2 %v576_v48 }
 0x274   :  { %v614_v49 = vpop.f32.mrf.mxu2 }
 0x275   :  { %v615_v50 = vadd.f32 %v671_v55, %v614_v49 }
 0x277   :  { %617 = vst [vmem:[#allocation15] sm:$0xff] %v615_v50 }
 0x278   :  { %628 = dma.vmem_to_hbm [thread:$0]  %s624_s6, 128, %s626_s21, [#allocation5]  }
 0x279   :  { %906 = dma.done.wait [#allocation5], 128  }
 0x27a   :  { %907 = vsyncadd [#allocation5], 4294967168 }
 0x27b   :  { %908 = dma.done.wait [#allocation17], 128  }
 0x27c   :  { %909 = vsyncadd [#allocation17], 4294967168 }
 0x27d   :  { %648 = vsyncpa [#allocation4], 1 }
 0x27e   :  { %649 = vsyncpa [#allocation7], 1 }
 0x27f   :  { %650 = vsyncpa [#allocation10], 1 }
 0x280   :  { %651 = vsyncpa [#allocation13], 1 }
 0x281   :  { %652 = vsyncpa [#allocation5], 1 }
 0x282   :  { %653 = vsyncpa [#allocation17], 1 }

</bundles_post_ra>
